<compile_context>
chip_gen: v5e
topology: v5e:2x2
jax: 0.10.0
libtpu: 0.0.40
codegen_flags: <defaults>
</compile_context>

<pallas_src>
import functools
import numpy as np
import jax
import jax.numpy as jnp
from jax.experimental import pallas as pl
from jax.experimental.pallas import tpu as pltpu

_VMEM_LIMIT = 32 * 1024 * 1024


def _round_up(v, m):
    return (v + m - 1) // m * m


# ----------------------------------------------------------------------------- matmul kernel
def _mm_kernel(a_ref, w_ref, b_ref, o_ref, acc_ref, *, act, nk):
    k = pl.program_id(1)

    @pl.when(k == 0)
    def _():
        # bias folded into the accumulator init (no per-step bias add)
        acc_ref[...] = jnp.broadcast_to(b_ref[...], acc_ref.shape)

    acc_ref[...] += jnp.dot(a_ref[...], w_ref[...],
                            preferred_element_type=jnp.float32)

    @pl.when(k == nk - 1)
    def _():
        y = acc_ref[...]
        if act:
            y = y * jax.nn.sigmoid(y)          # SiLU epilogue (f32)
        o_ref[...] = y


def matmul_bias(a, w, b, act=False):
    """(M,K) @ (K,N) + bias, optional fused SiLU.

    bf16 MXU inputs / f32 accumulate, K-tiled accumulator, lane-dense (>=128) output
    columns, M tiles up to 512 rows."""
    M, K = a.shape
    N = w.shape[1]
    a = a.astype(jnp.float32)
    w = w.astype(jnp.float32)
    b = b.astype(jnp.float32)

    # lane-dense output columns
    Np = _round_up(N, 128)
    if Np != N:
        w = jnp.pad(w, ((0, 0), (0, Np - N)))
        b = jnp.pad(b, ((0, Np - N),))

    # K tiling (only when the weight slab gets big)
    if K > 1024:
        tk = 512
        Kp = _round_up(K, tk)
        if Kp != K:
            a = jnp.pad(a, ((0, 0), (0, Kp - K)))
            w = jnp.pad(w, ((0, Kp - K), (0, 0)))
    else:
        tk, Kp = K, K
    nk = Kp // tk

    # M tiling
    Mr = _round_up(M, 8)
    tm = Mr if Mr <= 512 else 512
    Mp = _round_up(Mr, tm)
    if Mp != M:
        a = jnp.pad(a, ((0, Mp - M), (0, 0)))

    out = pl.pallas_call(
        functools.partial(_mm_kernel, act=act, nk=nk),
        out_shape=jax.ShapeDtypeStruct((Mp, Np), jnp.float32),
        grid=(Mp // tm, nk),
        in_specs=[pl.BlockSpec((tm, tk), lambda i, k: (i, k)),
                  pl.BlockSpec((tk, Np), lambda i, k: (k, 0)),
                  pl.BlockSpec((1, Np), lambda i, k: (0, 0))],
        out_specs=pl.BlockSpec((tm, Np), lambda i, k: (i, 0)),
        scratch_shapes=[pltpu.VMEM((tm, Np), jnp.float32)],
        compiler_params=pltpu.CompilerParams(
            dimension_semantics=("parallel", "arbitrary"),
            vmem_limit_bytes=_VMEM_LIMIT),
    )(a.astype(jnp.bfloat16), w.astype(jnp.bfloat16), b.reshape(1, Np))
    if Mp != M or Np != N:
        out = out[:M, :N]
    return out


# ----------------------------------------------------------------------------- fused 3x3 conv
def _conv3x3_kernel(x_ref, w_ref, b_ref, o_ref, *, H, W):
    xp = x_ref[0]                                          # (H+2, W+2, Cin) bf16
    o_ref[0] = jnp.broadcast_to(b_ref[...], o_ref.shape[1:])    # init with bias (f32)
    for dy in range(3):
        for dx in range(3):
            win = xp[dy:dy + H, dx:dx + W, :]              # shifted window (H, W, Cin)
            win2 = win.reshape(H * W, win.shape[-1])
            o_ref[0] += jnp.dot(win2, w_ref[dy * 3 + dx],
                                preferred_element_type=jnp.float32)


def _conv3x3_fused(x, w, b):
    """3x3 / stride 1 / pad 1 conv: halo-padded image tile loaded once per batch element,
    9 tap matmuls accumulated in VMEM (no im2col HBM materialization)."""
    B, H, W, Cin = x.shape
    Cout = w.shape[-1]
    Coutp = _round_up(Cout, 128)
    wp = w if Coutp == Cout else jnp.pad(w, ((0, 0), (0, 0), (0, 0), (0, Coutp - Cout)))
    bp = b if Coutp == Cout else jnp.pad(b, ((0, Coutp - Cout),))
    xp = jnp.pad(x, ((0, 0), (1, 1), (1, 1), (0, 0))).astype(jnp.bfloat16)
    w9 = wp.reshape(9, Cin, Coutp).astype(jnp.bfloat16)
    out = pl.pallas_call(
        functools.partial(_conv3x3_kernel, H=H, W=W),
        out_shape=jax.ShapeDtypeStruct((B, H * W, Coutp), jnp.float32),
        grid=(B,),
        in_specs=[pl.BlockSpec((1, H + 2, W + 2, Cin), lambda i: (i, 0, 0, 0)),
                  pl.BlockSpec((9, Cin, Coutp), lambda i: (0, 0, 0)),
                  pl.BlockSpec((1, Coutp), lambda i: (0, 0))],
        out_specs=pl.BlockSpec((1, H * W, Coutp), lambda i: (i, 0, 0)),
        compiler_params=pltpu.CompilerParams(
            dimension_semantics=("parallel",), vmem_limit_bytes=_VMEM_LIMIT),
    )(xp, w9, bp.reshape(1, Coutp).astype(jnp.float32))
    out = out.reshape(B, H, W, Coutp)
    return out if Coutp == Cout else out[..., :Cout]


def _conv_im2col(x, w, b, stride=1, pad=1):
    """Fallback conv path (im2col + Pallas matmul) for shapes the fused kernel skips."""
    if isinstance(pad, int):
        pad = ((pad, pad), (pad, pad))
    N, H, W, Cin = x.shape
    kh, kw, _, Cout = w.shape
    xp = jnp.pad(x, ((0, 0), pad[0], pad[1], (0, 0)))
    Hp = H + pad[0][0] + pad[0][1]
    Wp = W + pad[1][0] + pad[1][1]
    Ho = (Hp - kh) // stride + 1
    Wo = (Wp - kw) // stride + 1
    cols = []
    for dy in range(kh):
        for dx in range(kw):
            cols.append(jax.lax.slice(
                xp, (0, dy, dx, 0),
                (N, dy + (Ho - 1) * stride + 1, dx + (Wo - 1) * stride + 1, Cin),
                (1, stride, stride, 1)))
    pat = jnp.concatenate(cols, axis=-1).reshape(N * Ho * Wo, kh * kw * Cin)
    y = matmul_bias(pat, w.reshape(kh * kw * Cin, Cout), b)
    return y.reshape(N, Ho, Wo, Cout)


_FUSED3X3_STATE = {"ok": None}


def conv2d(x, w, b, stride=1, pad=1):
    """NHWC conv. 1x1 -> plain matmul; 3x3/s1/p1 -> fused halo kernel; else im2col."""
    kh, kw, Cin, Cout = w.shape
    B, H, W, _ = x.shape
    if kh == 1 and kw == 1 and stride == 1 and pad == 0:
        y = matmul_bias(x.reshape(B * H * W, Cin), w.reshape(Cin, Cout), b)
        return y.reshape(B, H, W, Cout)
    if (kh == 3 and kw == 3 and stride == 1 and pad == 1
            and W % 8 == 0 and _FUSED3X3_STATE["ok"] is not False):
        try:
            out = _conv3x3_fused(x, w, b)
            if _FUSED3X3_STATE["ok"] is None:
                jax.block_until_ready(out)
                _FUSED3X3_STATE["ok"] = True
            return out
        except Exception:
            # TODO(synk): fused halo-conv unsupported on this backend; im2col fallback.
            _FUSED3X3_STATE["ok"] = False
    return _conv_im2col(x, w, b, stride=stride, pad=pad)


# ----------------------------------------------------------------------------- GroupNorm
def _gn_kernel(x_ref, sc_ref, sh_ref, g_ref, gt_ref, o_ref, *, cnt, eps, act):
    x = x_ref[0]                                              # (HW, C) f32
    s = jnp.sum(x, axis=0, keepdims=True)                     # (1, C)
    ss = jnp.sum(x * x, axis=0, keepdims=True)                # (1, C)
    gs = jnp.dot(s, g_ref[...], preferred_element_type=jnp.float32)    # (1, G)
    gss = jnp.dot(ss, g_ref[...], preferred_element_type=jnp.float32)  # (1, G)
    mean_g = gs / cnt
    var_g = jnp.maximum(gss / cnt - mean_g * mean_g, 0.0)     # clamp for numerical safety
    mean_c = jnp.dot(mean_g, gt_ref[...], preferred_element_type=jnp.float32)  # (1, C)
    var_c = jnp.dot(var_g, gt_ref[...], preferred_element_type=jnp.float32)    # (1, C)
    y = (x - mean_c) * jax.lax.rsqrt(var_c + eps)
    y = y * sc_ref[0] + sh_ref[0]
    if act:
        y = y * jax.nn.sigmoid(y)          # SiLU (f32 on the VPU)
    o_ref[0] = y


def group_norm(x_nhwc, scale_bc, shift_bc, num_groups, eps=1e-6, act=True):
    """GroupNorm over (H,W,channels-in-group) with per-(batch,channel) scale/shift."""
    B, H, W, C = x_nhwc.shape
    G = num_groups
    cg = C // G
    xv = x_nhwc.reshape(B, H * W, C).astype(jnp.float32)
    gmat = (jnp.arange(C)[:, None] // cg == jnp.arange(G)[None, :]).astype(jnp.float32)
    gmat_t = gmat.T
    sc = scale_bc.reshape(B, 1, C).astype(jnp.float32)
    sh = shift_bc.reshape(B, 1, C).astype(jnp.float32)
    out = pl.pallas_call(
        functools.partial(_gn_kernel, cnt=float(H * W * cg), eps=eps, act=act),
        out_shape=jax.ShapeDtypeStruct((B, H * W, C), jnp.float32),
        grid=(B,),
        in_specs=[pl.BlockSpec((1, H * W, C), lambda b: (b, 0, 0)),
                  pl.BlockSpec((1, 1, C), lambda b: (b, 0, 0)),
                  pl.BlockSpec((1, 1, C), lambda b: (b, 0, 0)),
                  pl.BlockSpec((C, G), lambda b: (0, 0)),
                  pl.BlockSpec((G, C), lambda b: (0, 0))],
        out_specs=pl.BlockSpec((1, H * W, C), lambda b: (b, 0, 0)),
        compiler_params=pltpu.CompilerParams(
            dimension_semantics=("parallel",), vmem_limit_bytes=_VMEM_LIMIT),
    )(xv, sc, sh, gmat, gmat_t)
    return out.reshape(B, H, W, C)


# ----------------------------------------------------------------------------- attention
def _attn_kernel(q_ref, k_ref, v_ref, o_ref, *, scale):
    q = q_ref[0]                                              # (heads, Lq, D) bf16
    k = k_ref[0]
    v = v_ref[0]
    s = jnp.einsum('hqd,hkd->hqk', q, k,
                   preferred_element_type=jnp.float32) * scale
    m = jnp.max(s, axis=-1, keepdims=True)
    p = jnp.exp(s - m)
    denom = jnp.sum(p, axis=-1, keepdims=True)
    p = p * pl.reciprocal(denom, approx=True)                 # EUP reciprocal, not VPU divide
    o_ref[0] = jnp.einsum('hqk,hkd->hqd', p.astype(v.dtype), v,
                          preferred_element_type=jnp.float32)


def mh_attention(q, k, v, scale):
    """q:(B,heads,Lq,D) k,v:(B,heads,Lk,D) -> (B,heads,Lq,D); all heads of one batch
    element per grid step (batched einsum), bf16 MXU inputs, f32 softmax."""
    B, Hh, Lq, D = q.shape
    Lk = k.shape[2]
    return pl.pallas_call(
        functools.partial(_attn_kernel, scale=float(scale)),
        out_shape=jax.ShapeDtypeStruct((B, Hh, Lq, D), jnp.float32),
        grid=(B,),
        in_specs=[pl.BlockSpec((1, Hh, Lq, D), lambda i: (i, 0, 0, 0)),
                  pl.BlockSpec((1, Hh, Lk, D), lambda i: (i, 0, 0, 0)),
                  pl.BlockSpec((1, Hh, Lk, D), lambda i: (i, 0, 0, 0))],
        out_specs=pl.BlockSpec((1, Hh, Lq, D), lambda i: (i, 0, 0, 0)),
        compiler_params=pltpu.CompilerParams(
            dimension_semantics=("parallel",), vmem_limit_bytes=_VMEM_LIMIT),
    )(q.astype(jnp.bfloat16), k.astype(jnp.bfloat16), v.astype(jnp.bfloat16))


# ----------------------------------------------------------------------------- FIR resampling
# TODO(synk): separable depthwise FIR left as shifted-adds in XLA (bandwidth-trivial after
# separation); previously this was a dense CxC Pallas matmul which the review flagged.
_FIR_K1 = np.array([1., 3., 3., 1.], np.float32)
_FIR_K1 = _FIR_K1 / _FIR_K1.sum()          # [1,3,3,1]/8


def fir_downsample(x):
    """upfirdn2d(x, outer(k,k), down=2, pad=(1,1)) with k=[1,3,3,1] (normalized)."""
    B, H, W, C = x.shape
    Ho, Wo = H // 2, W // 2
    xp = jnp.pad(x, ((0, 0), (1, 1), (0, 0), (0, 0)))
    y = None
    for i in range(4):
        sl = jax.lax.slice(xp, (0, i, 0, 0),
                           (B, i + 2 * (Ho - 1) + 1, W, C), (1, 2, 1, 1))
        y = _FIR_K1[i] * sl if y is None else y + _FIR_K1[i] * sl
    yp = jnp.pad(y, ((0, 0), (0, 0), (1, 1), (0, 0)))
    o = None
    for j in range(4):
        sl = jax.lax.slice(yp, (0, 0, j, 0),
                           (B, Ho, j + 2 * (Wo - 1) + 1, C), (1, 1, 2, 1))
        o = _FIR_K1[j] * sl if o is None else o + _FIR_K1[j] * sl
    return o


def fir_upsample(x):
    """upfirdn2d(x, outer(k,k)*4, up=2, pad=(2,1)) with k=[1,3,3,1] (normalized)."""
    B, H, W, C = x.shape
    z = jnp.zeros((B, H, 2, W, 2, C), x.dtype).at[:, :, 0, :, 0, :].set(x)
    z = z.reshape(B, 2 * H, 2 * W, C)
    k = _FIR_K1 * 2.0                      # per-axis gain, total gain = 4 = factor^2
    zp = jnp.pad(z, ((0, 0), (2, 1), (0, 0), (0, 0)))
    y = None
    for i in range(4):
        sl = jax.lax.slice(zp, (0, i, 0, 0), (B, i + 2 * H, 2 * W, C))
        y = k[i] * sl if y is None else y + k[i] * sl
    yp = jnp.pad(y, ((0, 0), (0, 0), (2, 1), (0, 0)))
    o = None
    for j in range(4):
        sl = jax.lax.slice(yp, (0, 0, j, 0), (B, 2 * H, j + 2 * W, C))
        o = k[j] * sl if o is None else o + k[j] * sl
    return o


# ----------------------------------------------------------------------------- module appliers
def silu(x):
    return x * jax.nn.sigmoid(x)


def timestep_embedding(t, dim, max_positions=10000):
    half = dim // 2
    freqs = jnp.exp(jnp.arange(half, dtype=jnp.float32) * (-np.log(max_positions) / (half - 1)))
    args = t.astype(jnp.float32)[:, None] * freqs[None, :]
    return jnp.concatenate([jnp.sin(args), jnp.cos(args)], axis=1)


def split_heads_spatial(t, heads):        # (B,H,W,C) -> (B, heads, H*W, D)
    B, H, W, C = t.shape
    D = C // heads
    t = t.reshape(B, H * W, heads, D)
    return jnp.transpose(t, (0, 2, 1, 3))


def merge_heads_spatial(t, B, H, W, heads):  # (B, heads, H*W, D) -> (B,H,W,C)
    D = t.shape[-1]
    t = jnp.transpose(t, (0, 2, 1, 3))
    return t.reshape(B, H, W, heads * D)


def split_heads_seq(t, heads):            # (B,L,C) -> (B, heads, L, D)
    B, L, C = t.shape
    D = C // heads
    return jnp.transpose(t.reshape(B, L, heads, D), (0, 2, 1, 3))


def apply_resblock(p, x, temb_act):
    """ResnetBlockBigGANppGN: conditional-GN(+SiLU) -> (FIR resample) -> conv3x3 ->
    conditional-GN(+SiLU) -> conv3x3 -> skip (1x1 if needed), /sqrt(2)."""
    in_ch = x.shape[-1]
    out_ch = p['conv0_w'].shape[-1]
    up, down = p['up'], p['down']
    ss0 = matmul_bias(temb_act, p['dense0_w'], p['dense0_b'])          # (B, 2*in_ch)
    h = group_norm(x, 1.0 + ss0[:, :in_ch], ss0[:, in_ch:],
                   num_groups=min(in_ch // 4, 32), act=True)
    if up:
        h = fir_upsample(h)
        x = fir_upsample(x)
    elif down:
        h = fir_downsample(h)
        x = fir_downsample(x)
    h = conv2d(h, p['conv0_w'], p['conv0_b'], pad=1)
    ss1 = matmul_bias(temb_act, p['dense1_w'], p['dense1_b'])          # (B, 2*out_ch)
    h = group_norm(h, 1.0 + ss1[:, :out_ch], ss1[:, out_ch:],
                   num_groups=min(out_ch // 4, 32), act=True)
    # dropout p=0.0 -> identity
    h = conv2d(h, p['conv1_w'], p['conv1_b'], pad=1)
    if 'conv2_w' in p:
        x = conv2d(x, p['conv2_w'], p['conv2_b'], pad=0)
    return (x + h) / np.sqrt(2.0)


def apply_attn(p, x, n_head_channels):
    """AttnBlockpp: GN -> fused QKV NIN -> multi-head spatial softmax attn -> NIN -> skip."""
    B, H, W, C = x.shape
    heads = max(1, C // n_head_channels)
    D = C // heads
    h = group_norm(x, jnp.broadcast_to(p['gn_g'][None], (B, C)),
                   jnp.broadcast_to(p['gn_b'][None], (B, C)),
                   num_groups=min(C // 4, 32), act=False)
    flat = h.reshape(B * H * W, C)
    qkv_w = jnp.concatenate([p['q_w'], p['k_w'], p['v_w']], axis=1)    # (C, 3C)
    qkv_b = jnp.concatenate([p['q_b'], p['k_b'], p['v_b']])
    qkv = matmul_bias(flat, qkv_w, qkv_b)                              # single fused launch
    q, k, v = jnp.split(qkv, 3, axis=-1)
    oh = mh_attention(split_heads_spatial(q.reshape(B, H, W, C), heads),
                      split_heads_spatial(k.reshape(B, H, W, C), heads),
                      split_heads_spatial(v.reshape(B, H, W, C), heads),
                      float(D) ** -0.5)
    o = merge_heads_spatial(oh, B, H, W, heads)
    o = matmul_bias(o.reshape(B * H * W, C), p['o_w'], p['o_b']).reshape(B, H, W, C)
    return (x + o) / np.sqrt(2.0)


def apply_imgtext_attn(p, x, ctx, n_head_channels):
    # TODO(synk): layerspp.ImageTextsAttention source not provided; implemented as the
    # standard GN -> q(from image) / k,v(Linear from text context) multi-head cross
    # attention with output NIN and skip_rescale.
    B, H, W, C = x.shape
    heads = max(1, C // n_head_channels)
    D = C // heads
    h = group_norm(x, jnp.broadcast_to(p['gn_g'][None], (B, C)),
                   jnp.broadcast_to(p['gn_b'][None], (B, C)),
                   num_groups=min(C // 4, 32), act=False)
    q = matmul_bias(h.reshape(B * H * W, C), p['q_w'], p['q_b']).reshape(B, H, W, C)
    L, Dc = ctx.shape[1], ctx.shape[2]
    kv_w = jnp.concatenate([p['k_w'], p['v_w']], axis=1)               # (Dc, 2C)
    kv_b = jnp.concatenate([p['k_b'], p['v_b']])
    kv = matmul_bias(ctx.reshape(B * L, Dc), kv_w, kv_b)               # fused K/V launch
    k, v = jnp.split(kv, 2, axis=-1)
    oh = mh_attention(split_heads_spatial(q, heads),
                      split_heads_seq(k.reshape(B, L, C), heads),
                      split_heads_seq(v.reshape(B, L, C), heads),
                      float(D) ** -0.5)
    o = merge_heads_spatial(oh, B, H, W, heads)
    o = matmul_bias(o.reshape(B * H * W, C), p['o_w'], p['o_b']).reshape(B, H, W, C)
    return (x + o) / np.sqrt(2.0)


# ----------------------------------------------------------------------------- params
class _PInit:
    def __init__(self, key):
        self._key = key

    def normal(self, shape, std=0.05):
        self._key, sub = jax.random.split(self._key)
        return jax.random.normal(sub, shape, jnp.float32) * std


def _resblock_params(pi, in_ch, out_ch, temb_dim, up=False, down=False):
    p = dict(up=up, down=down,
             dense0_w=pi.normal((temb_dim, 2 * in_ch)), dense0_b=jnp.zeros((2 * in_ch,), jnp.float32),
             conv0_w=pi.normal((3, 3, in_ch, out_ch)), conv0_b=jnp.zeros((out_ch,), jnp.float32),
             dense1_w=pi.normal((temb_dim, 2 * out_ch)), dense1_b=jnp.zeros((2 * out_ch,), jnp.float32),
             conv1_w=pi.normal((3, 3, out_ch, out_ch)), conv1_b=jnp.zeros((out_ch,), jnp.float32))
    if in_ch != out_ch or up or down:
        p['conv2_w'] = pi.normal((1, 1, in_ch, out_ch))
        p['conv2_b'] = jnp.zeros((out_ch,), jnp.float32)
    return p


def _attn_params(pi, C):
    z = jnp.zeros((C,), jnp.float32)
    return dict(gn_g=jnp.ones((C,), jnp.float32), gn_b=z,
                q_w=pi.normal((C, C)), q_b=z, k_w=pi.normal((C, C)), k_b=z,
                v_w=pi.normal((C, C)), v_b=z, o_w=pi.normal((C, C)), o_b=z)


def _imgtext_params(pi, C, ctx_dim):
    z = jnp.zeros((C,), jnp.float32)
    return dict(gn_g=jnp.ones((C,), jnp.float32), gn_b=z,
                q_w=pi.normal((C, C)), q_b=z,
                k_w=pi.normal((ctx_dim, C)), k_b=z,
                v_w=pi.normal((ctx_dim, C)), v_b=z,
                o_w=pi.normal((C, C)), o_b=z)


def build_params(cfg, key):
    pi = _PInit(key)
    channels = cfg['channels']
    num_frames = cfg['num_frames']
    n_frames = num_frames + cfg['num_frames_cond']
    nf = cfg['ngf']
    numf = cfg['ngf']
    ch_mult = cfg['ch_mult']
    num_res_blocks = cfg['num_res_blocks']
    attn_res = cfg['attn_resolutions']
    ctx_dim = cfg['context_dim']
    concat_dim = cfg['concat_dim']
    num_resolutions = len(ch_mult)
    all_res = [cfg['image_size'] // 2 ** i for i in range(num_resolutions)]
    temb_dim = nf * 4

    modules = []
    modules.append(('linear', dict(w=pi.normal((nf, 4 * nf)), b=jnp.zeros((4 * nf,), jnp.float32))))
    modules.append(('linear', dict(w=pi.normal((4 * nf, 4 * nf)), b=jnp.zeros((4 * nf,), jnp.float32))))
    modules.append(('conv', dict(w=pi.normal((3, 3, channels * n_frames, nf)),
                                 b=jnp.zeros((nf,), jnp.float32))))
    hs_c = [nf]
    in_ch = nf
    for i_level in range(num_resolutions):
        for _ in range(num_res_blocks):
            out_ch = nf * ch_mult[i_level]
            modules.append(('res', _resblock_params(pi, in_ch, out_ch, temb_dim)))
            in_ch = out_ch
            if all_res[i_level] in attn_res:
                modules.append(('attn', _attn_params(pi, in_ch)))
            hs_c.append(in_ch)
        if i_level != num_resolutions - 1:
            modules.append(('res', _resblock_params(pi, in_ch, in_ch, temb_dim, down=True)))
            hs_c.append(in_ch)
    modules.append(('res', _resblock_params(pi, in_ch, in_ch, temb_dim)))
    modules.append(('attn', _attn_params(pi, in_ch)))
    modules.append(('imgtext', _imgtext_params(pi, in_ch, ctx_dim)))
    modules.append(('res', _resblock_params(pi, in_ch, in_ch, temb_dim)))
    for i_level in reversed(range(num_resolutions)):
        for _ in range(num_res_blocks + 1):
            out_ch = numf * ch_mult[i_level]
            in_ch_old = hs_c.pop()
            modules.append(('res', _resblock_params(pi, in_ch + in_ch_old, out_ch, temb_dim)))
            in_ch = out_ch
        if all_res[i_level] in attn_res:
            modules.append(('attn', _attn_params(pi, in_ch)))
            modules.append(('imgtext', _imgtext_params(pi, in_ch, ctx_dim)))
        if i_level != 0:
            modules.append(('res', _resblock_params(pi, in_ch, in_ch, temb_dim, up=True)))
    assert not hs_c
    modules.append(('actnorm', dict(g=jnp.ones((in_ch,), jnp.float32),
                                    b=jnp.zeros((in_ch,), jnp.float32))))
    modules.append(('conv', dict(w=pi.normal((3, 3, in_ch, channels * num_frames)),
                                 b=jnp.zeros((channels * num_frames,), jnp.float32))))

    return dict(modules=modules,
                pre_w=pi.normal((channels + concat_dim, channels)),   # pre_image 1x1 conv
                pre_b=jnp.zeros((channels,), jnp.float32))


# ----------------------------------------------------------------------------- forward
def ncsnpp_forward(params, cfg, x_nchw, time_cond, texts):
    beta = cfg['beta']
    channels = cfg['channels']
    num_frames = cfg['num_frames']
    nf = cfg['ngf']
    ch_mult = cfg['ch_mult']
    num_resolutions = len(ch_mult)
    num_res_blocks = cfg['num_res_blocks']
    attn_res = cfg['attn_resolutions']
    nhc = cfg['n_head_channels']
    concat_dim = cfg['concat_dim']
    modules = params['modules']
    m_idx = 0

    B, FC, H, W = x_nchw.shape
    x0 = jnp.transpose(x_nchw, (0, 2, 3, 1)).astype(jnp.float32)   # NHWC, channels = (f c)

    # TODO(synk): reference draws torch.rand-based zero/keep batch masks but never uses
    # them later in forward; omitted (no effect on the returned tensor).
    xf = x0.reshape(B, H, W, num_frames, channels)
    # TODO(synk): reference allocates `concat` with concat_dim/2 channels, which is
    # inconsistent with pre_image's declared (channels+concat_dim) input width; we use
    # concat_dim zero channels so the declared pre_image conv shape is respected.
    concat = jnp.zeros((B, H, W, num_frames, concat_dim), jnp.float32)
    xc = jnp.concatenate([xf, concat], axis=-1)
    pre = matmul_bias(xc.reshape(-1, channels + concat_dim), params['pre_w'], params['pre_b'])
    pre = pre.reshape(B, H, W, num_frames * channels)
    x = x0 + beta * pre

    # positional time embedding (the `sigmas` buffer indexed in the reference is unused
    # downstream, so it is not materialized).
    temb = timestep_embedding(time_cond, nf)
    _, p = modules[m_idx]; m_idx += 1
    temb = matmul_bias(temb, p['w'], p['b'], act=True)     # SiLU(Linear0(emb)) fused
    _, p = modules[m_idx]; m_idx += 1
    temb = matmul_bias(temb, p['w'], p['b'])               # Linear1
    temb_act = silu(temb)                                  # act_emb applied inside cond-GN

    _, p = modules[m_idx]; m_idx += 1
    hs = [conv2d(x, p['w'], p['b'], pad=1)]

    for i_level in range(num_resolutions):
        for _ in range(num_res_blocks):
            _, p = modules[m_idx]; m_idx += 1
            h = apply_resblock(p, hs[-1], temb_act)
            if h.shape[2] in attn_res:
                _, p = modules[m_idx]; m_idx += 1
                h = apply_attn(p, h, nhc)
            hs.append(h)
        if i_level != num_resolutions - 1:
            _, p = modules[m_idx]; m_idx += 1
            h = apply_resblock(p, hs[-1], temb_act)        # FIR downsample block
            hs.append(h)

    h = hs[-1]
    _, p = modules[m_idx]; m_idx += 1
    h = apply_resblock(p, h, temb_act)
    _, p = modules[m_idx]; m_idx += 1
    h = apply_attn(p, h, nhc)
    c = texts.astype(jnp.float32)
    _, p = modules[m_idx]; m_idx += 1
    h = h + apply_imgtext_attn(p, h, c, nhc) * beta
    _, p = modules[m_idx]; m_idx += 1
    h = apply_resblock(p, h, temb_act)

    for i_level in reversed(range(num_resolutions)):
        for _ in range(num_res_blocks + 1):
            prev = hs.pop()
            _, p = modules[m_idx]; m_idx += 1
            h = apply_resblock(p, jnp.concatenate([h, prev], axis=-1), temb_act)
        if h.shape[2] in attn_res:
            _, p = modules[m_idx]; m_idx += 1
            h = apply_attn(p, h, nhc)
            _, p = modules[m_idx]; m_idx += 1
            h = apply_imgtext_attn(p, h, c, nhc)
        if i_level != 0:
            _, p = modules[m_idx]; m_idx += 1
            h = apply_resblock(p, h, temb_act)             # FIR upsample block
    assert not hs

    _, p = modules[m_idx]; m_idx += 1
    C = h.shape[-1]
    h = group_norm(h, jnp.broadcast_to(p['g'][None], (h.shape[0], C)),
                   jnp.broadcast_to(p['b'][None], (h.shape[0], C)),
                   num_groups=min(C // 4, 32), act=True)
    _, p = modules[m_idx]; m_idx += 1
    h = conv2d(h, p['w'], p['b'], pad=1)
    assert m_idx == len(modules)

    return jnp.transpose(h, (0, 3, 1, 2))                  # back to NCHW


# ----------------------------------------------------------------------------- main
if __name__ == "__main__":
    cfg = dict(image_size=16, channels=3, num_frames=2, num_frames_cond=0,
               ngf=32, ch_mult=(1, 2), num_res_blocks=1, attn_resolutions=(8,),
               n_head_channels=32, concat_dim=4, context_dim=16, beta=0.1)

    key = jax.random.PRNGKey(0)
    kp, kx, kc = jax.random.split(key, 3)
    params = build_params(cfg, kp)

    B = 2
    x = jax.random.normal(
        kx, (B, cfg['num_frames'] * cfg['channels'], cfg['image_size'], cfg['image_size']),
        jnp.float32)
    time_cond = jnp.array([3, 7], jnp.int32)
    texts = jax.random.normal(kc, (B, 8, cfg['context_dim']), jnp.float32)

    out = ncsnpp_forward(params, cfg, x, time_cond, texts)
    out = jax.block_until_ready(out)
    assert out.shape == (B, cfg['channels'] * cfg['num_frames'],
                         cfg['image_size'], cfg['image_size'])
    assert bool(jnp.all(jnp.isfinite(out)))
    print("KERNEL_OK")
</pallas_src>

<mosaic_0001>
module attributes {stable_mosaic.version = 11 : i64} {
  func.func @_mm_kernel(%arg0: i32, %arg1: i32, %arg2: memref<512x7xbf16, #tpu.memory_space<vmem>>, %arg3: memref<7x128xbf16, #tpu.memory_space<vmem>>, %arg4: memref<1x128xf32, #tpu.memory_space<vmem>>, %arg5: memref<512x128xf32, #tpu.memory_space<vmem>>, %arg6: memref<512x128xf32, #tpu.memory_space<vmem>>) attributes {dimension_semantics = [#tpu.dimension_semantics<parallel>, #tpu.dimension_semantics<arbitrary>], iteration_bounds = array<i64: 2, 1>, scalar_prefetch = 0 : i64, scratch_operands = 1 : i64, tpu.core_type = #tpu.core_type<tc>, window_params = [{transform_indices = @transform_0, window_bounds = array<i64: 512, 7>}, {transform_indices = @transform_1, window_bounds = array<i64: 7, 128>}, {pipeline_mode = #tpu.pipeline_mode<synchronous>, transform_indices = @transform_2, window_bounds = array<i64: 1, 128>}, {transform_indices = @transform_3, window_bounds = array<i64: 512, 128>}]} {
    %c0_i32 = arith.constant 0 : i32
    %0 = arith.cmpi eq, %arg1, %c0_i32 : i32
    %1 = arith.extui %0 : i1 to i32
    %c0_i32_0 = arith.constant 0 : i32
    %2 = arith.cmpi ne, %1, %c0_i32_0 : i32
    scf.if %2 {
      %c0_10 = arith.constant 0 : index
      %c0_11 = arith.constant 0 : index
      %12 = vector.load %arg4[%c0_10, %c0_11] : memref<1x128xf32, #tpu.memory_space<vmem>>, vector<1x128xf32>
      %13 = vector.shape_cast %12 : vector<1x128xf32> to vector<1x128xf32>
      %14 = vector.broadcast %13 : vector<1x128xf32> to vector<512x128xf32>
      %c0_12 = arith.constant 0 : index
      %c0_13 = arith.constant 0 : index
      %15 = vector.load %arg6[%c0_12, %c0_13] : memref<512x128xf32, #tpu.memory_space<vmem>>, vector<512x128xf32>
      tpu.vector_store %arg6[%c0_12, %c0_13], %14 {strides = array<i32>} : memref<512x128xf32, #tpu.memory_space<vmem>>, vector<512x128xf32>,
    } else {
    }
    %c0 = arith.constant 0 : index
    %c0_1 = arith.constant 0 : index
    %3 = vector.load %arg6[%c0, %c0_1] : memref<512x128xf32, #tpu.memory_space<vmem>>, vector<512x128xf32>
    %c0_2 = arith.constant 0 : index
    %c0_3 = arith.constant 0 : index
    %4 = vector.load %arg2[%c0_2, %c0_3] : memref<512x7xbf16, #tpu.memory_space<vmem>>, vector<512x7xbf16>
    %c0_4 = arith.constant 0 : index
    %c0_5 = arith.constant 0 : index
    %5 = vector.load %arg3[%c0_4, %c0_5] : memref<7x128xbf16, #tpu.memory_space<vmem>>, vector<7x128xbf16>
    %cst = arith.constant dense<0.000000e+00> : vector<512x128xf32>
    %6 = tpu.matmul %4, %5, %cst {dimension_numbers = #tpu.dot_dimension_numbers<[1], [0], [0], [1], [0, 0, 1, 1], [], []>} : vector<512x7xbf16>, vector<7x128xbf16>, vector<512x128xf32> -> vector<512x128xf32>
    %7 = arith.addf %3, %6 : vector<512x128xf32>
    %c0_6 = arith.constant 0 : index
    %c0_7 = arith.constant 0 : index
    %8 = vector.load %arg6[%c0_6, %c0_7] : memref<512x128xf32, #tpu.memory_space<vmem>>, vector<512x128xf32>
    tpu.vector_store %arg6[%c0_6, %c0_7], %7 {strides = array<i32>} : memref<512x128xf32, #tpu.memory_space<vmem>>, vector<512x128xf32>,
    %c0_i32_8 = arith.constant 0 : i32
    %9 = arith.cmpi eq, %arg1, %c0_i32_8 : i32
    %10 = arith.extui %9 : i1 to i32
    %c0_i32_9 = arith.constant 0 : i32
    %11 = arith.cmpi ne, %10, %c0_i32_9 : i32
    scf.if %11 {
      %c0_10 = arith.constant 0 : index
      %c0_11 = arith.constant 0 : index
      %12 = vector.load %arg6[%c0_10, %c0_11] : memref<512x128xf32, #tpu.memory_space<vmem>>, vector<512x128xf32>
      %c0_12 = arith.constant 0 : index
      %c0_13 = arith.constant 0 : index
      %13 = vector.load %arg5[%c0_12, %c0_13] : memref<512x128xf32, #tpu.memory_space<vmem>>, vector<512x128xf32>
      tpu.vector_store %arg5[%c0_12, %c0_13], %12 {strides = array<i32>} : memref<512x128xf32, #tpu.memory_space<vmem>>, vector<512x128xf32>,
    } else {
    }
    return
  }
  func.func @transform_0(%arg0: i32, %arg1: i32) -> (i32, i32) {
    %c0_i32 = arith.constant 0 : i32
    return %arg0, %arg1 : i32, i32
  }
  func.func @transform_1(%arg0: i32, %arg1: i32) -> (i32, i32) {
    %c0_i32 = arith.constant 0 : i32
    %c0_i32_0 = arith.constant 0 : i32
    return %arg1, %c0_i32 : i32, i32
  }
  func.func @transform_2(%arg0: i32, %arg1: i32) -> (i32, i32) {
    %c0_i32 = arith.constant 0 : i32
    %c0_i32_0 = arith.constant 0 : i32
    %c0_i32_1 = arith.constant 0 : i32
    return %c0_i32, %c0_i32_0 : i32, i32
  }
  func.func @transform_3(%arg0: i32, %arg1: i32) -> (i32, i32) {
    %c0_i32 = arith.constant 0 : i32
    %c0_i32_0 = arith.constant 0 : i32
    return %arg0, %c0_i32 : i32, i32
  }
}

</mosaic_0001>

<bundles_post_ra>
// kernel: tpu_custom_call.1
= control target key start
LH: loop header
LB: loop body
LE: loop exit
PB: predicated region body
PF: predicated region fallthrough
CT: control target
= control target key end

     0   :  { %8 = vsyncpa [#allocation4], 0  ;;  %s1887_s0 = inlined_call_operand.vmem [shape: bf16[1024,7], index: 0, kind: input, shape index: {}]   ;;  %s1888_s1 = inlined_call_operand.vmem [shape: bf16[7,128], index: 1, kind: input, shape index: {}]   ;;  %s1889_s2 = inlined_call_operand.vmem [shape: f32[1,128], index: 2, kind: input, shape index: {}]   ;;  %s1890_s3 = inlined_call_operand.hbm [shape: f32[1024,128], index: 3, kind: output, shape index: {}]  }
   0x1   :  { %10 = vsyncpa [#allocation4 + $0x1], 0  ;;  %s1582_s12 = smov 0   ;;  %s1584_s13 = smov 0  }
   0x2   :  { %s1586_s14 = smov 0   ;;  %s1588_s15 = smov 0  }
   0x3   :  { %s1590_s16 = smov 0   ;;  %s1592_s17 = smov 0  }
   0x4 LB: > { %s1210_s18 = sadd.s32 4294967295, %s1557_s17   ;;  %s1211_s19 = sadd.s32 4294967294, %s1557_s17   ;;  %s1557_s17 = sphi %s1592_s17, %s16_s17   ;;  %s1553_s16 = sphi %s1590_s16, %s1897_s16   ;;  %s1549_s15 = sphi %s1588_s15, %s1896_s15   ;;  %s1545_s14 = sphi %s1586_s14, %s1895_s14   ;;  %s1541_s13 = sphi %s1584_s13, %s1894_s13   ;;  %s1537_s12 = sphi %s1582_s12, %s1893_s12  }
   0x5   : > { %s28_s20 = sadd.s32 1, %s1553_s16  ;;  %s110_s21 = sadd.s32 1, %s1545_s14 }
   0x6   : > { %p30_p0 = scmp.ge.s32.totalorder %s28_s20, 2  ;;  %p120_p1 = scmp.ne.s32.totalorder %s1545_s14, %s1541_s13 }
   0x7   : > { %p121_p2 = scmp.eq.s32.totalorder %s1210_s18, 1  ;;  %p126_p3 = scmp.ne.s32.totalorder %s1541_s13, %s1537_s12 }
   0x8   : > { %s1899_s20 = smov (%p30_p0, %s28_s20), 0  ;;  %p127_p5 = scmp.eq.s32.totalorder %s1211_s19, 1 }
   0x9   : > { %p1622_p4 = por %p121_p2, %p120_p1  ;;  %s107_s23 = ssub.s32 %s1553_s16, %s1899_s20 }
   0xa   : > { %p1215_p6 = scmp.ge.s32.totalorder %s1557_s17, 1  ;;  %p108_p7 = scmp.eq.s32.totalorder %s107_s23, 0 }
   0xb   : > { %p1629_p8 = por %p127_p5, %p126_p3  ;;  %p167_p9 = scmp.lt.s32.totalorder %s1557_s17, 3 }
   0xc   : > { %s1635_s25 = scalar_select %p108_p7, %s1545_s14, %s110_s21  }
   0xd   : > { %p168_p10 = pnand %p1215_p6, %p167_p9 }
   0xe   : > { %s1217_s28 = sshll.u32 (!%p168_p10), %s1549_s15, 6  ;;  %s195_s6 = sand.u32 (!%p168_p10), 1, %s1541_s13  }
   0xf   : > { %171 = sbr.rel (%p168_p10) target bundleno = 288 (0x120), region = 32  ;;  %p199_p11 = scmp.lt.s32.totalorder (!%p168_p10), %s1217_s28, 127 }
  0x10   : > { %s1216_s7 = sshll.u32 (!%p168_p10), %s195_s6, 9  ;;  %s1416_s11 = sshll.u32 (!%p168_p10), %s1549_s15, 9 }
  0x11   : > { %s1720_s10 = scalar_lea.vmem (!%p168_p10), [#allocation3], %s1216_s7  ;;  %s1118_s21 = scalar_lea.hbm (!%p168_p10), %s1890_s3, %s1416_s11 }
  0x12   : > { %s1119_s15 = sshll.u32 (!%p168_p10), %s1720_s10, 4  ;;  %s1121_s23 = sshll.u32 (!%p168_p10), %s1118_s21, 4  ;;  %s1120_s15 = int_to_ptr.vmem [resolvable:$true] %s1119_s15  ;;  %s1122_s23 = int_to_ptr.hbm [resolvable:$true] %s1121_s23 }
  0x13   : > { %s1107_s26 = scalar_lea.sflag (!%p168_p10), [#allocation4], %s195_s6  ;;  %s1493_s27 = sshra.s32 (!%p168_p10), %s1122_s23, 4  ;;  %s1494_s27 = int_to_ptr.hbm [resolvable:$true] %s1493_s27 }
  0x14   : > { %v413_v0 = vld [vmem:[%s1888_s1] sm:$0xf]  ;;  %vm671_vm0 = vcmask 1042432   ;;  %vm672_vm1 = vcmask 1043456   ;;  %v1559_v1 = vmov 65535   ;;  %s1901_s28 = smov (!%p199_p11, %s1217_s28), 127  ;;  %p1500_p1 = scmp.lt.s32.totalorder %s1494_s27, %s1890_s3 }
  0x15   : > { %v673_v2 = vsel %vm671_vm0, 4294967295, %v1559_v1  ;;  %s1218_s29 = sshll.u32 %s1901_s28, 2  ;;  %vm574_vm2 = vcmask 56320   ;;  %v1716_v37 = vld [vmem:[%s1889_s2] ss:$0 sm:$0xff]  ;;  %s1495_s28 = scalar_lea.hbm %s1494_s27, 512 }
  0x16   : > { %v674_v3 = vsel %vm672_vm1, %v673_v2, 0  ;;  %s1644_s5 = scalar_lea.vmem %s1887_s0, %s1218_s29  ;;  %p1496_p12 = scmp.ne.s32.totalorder %s1494_s27, %s1495_s28 }
  0x17   : > { %v676_v4 = vand.u32 %v674_v3, %v413_v0  ;;  %v1384_v5 = vld [vmem:[%s1644_s5] sm:$0xff]  ;;  %v1385_v9 = vld [vmem:[%s1644_s5 + $0x8] sm:$0xff]  ;;  %v1386_v13 = vld [vmem:[%s1644_s5 + $0x10] sm:$0xff]  ;;  %s1499_s4 = scalar_lea.hbm %s1890_s3, 1024 }
  0x18   : > { %v1392_v6 = vld [vmem:[%s1644_s5 + $0x40] sm:$0xff]  ;;  %v1393_v10 = vld [vmem:[%s1644_s5 + $0x48] sm:$0xff]  ;;  %v1394_v14 = vld [vmem:[%s1644_s5 + $0x50] sm:$0xff]  ;;  %p1497_p13 = pnand %p1496_p12, %p1622_p4  ;;  %p1501_p2 = scmp.lt.s32.totalorder %s1499_s4, %s1495_s28 }
  0x19   : > { %685 = vmatpush.bf16.msra.mxu0 %v676_v4  ;;  %1417 = vmatpush.bf16.msra.mxu1 %v676_v4  ;;  %v1400_v7 = vld [vmem:[%s1644_s5 + $0x80] sm:$0xff]  ;;  %v1401_v11 = vld [vmem:[%s1644_s5 + $0x88] sm:$0xff]  ;;  %v1402_v15 = vld [vmem:[%s1644_s5 + $0x90] sm:$0xff] }
  0x1a   : > { %1418 = vmatpush.bf16.msra.mxu2 %v676_v4  ;;  %1419 = vmatpush.bf16.msra.mxu3 %v676_v4  ;;  %v1408_v8 = vld [vmem:[%s1644_s5 + $0xc0] sm:$0xff]  ;;  %v1409_v12 = vld [vmem:[%s1644_s5 + $0xc8] sm:$0xff]  ;;  %v1410_v16 = vld [vmem:[%s1644_s5 + $0xd0] sm:$0xff]  ;;  %p1498_p0 = pneg %p1497_p13  ;;  %p1502_p3 = por %p1501_p2, %p1500_p1 }
  0x1b   : > { %v1387_v17 = vld [vmem:[%s1644_s5 + $0x18] sm:$0xff]  ;;  %v1388_v21 = vld [vmem:[%s1644_s5 + $0x20] sm:$0xff]  ;;  %v1389_v25 = vld [vmem:[%s1644_s5 + $0x28] sm:$0xff] }
  0x1c   : > { %1347 = vmatmul.msk.bf16.vlgmr.msra.gmra.mxu0 %vm574_vm2, %v1384_v5  ;;  %1355 = vmatmul.msk.bf16.vlgmr.msra.gmra.mxu1 %vm574_vm2, %v1392_v6  ;;  %v1395_v18 = vld [vmem:[%s1644_s5 + $0x58] sm:$0xff]  ;;  %v1396_v22 = vld [vmem:[%s1644_s5 + $0x60] sm:$0xff]  ;;  %v1397_v26 = vld [vmem:[%s1644_s5 + $0x68] sm:$0xff]  ;;  %p1503_p5 = pnand %p1502_p3, %p1498_p0 }
  0x1d   : > { %1363 = vmatmul.msk.bf16.vlgmr.msra.gmra.mxu2 %vm574_vm2, %v1400_v7  ;;  %1371 = vmatmul.msk.bf16.vlgmr.msra.gmra.mxu3 %vm574_vm2, %v1408_v8  ;;  %v1403_v19 = vld [vmem:[%s1644_s5 + $0x98] sm:$0xff]  ;;  %v1404_v23 = vld [vmem:[%s1644_s5 + $0xa0] sm:$0xff]  ;;  %v1405_v27 = vld [vmem:[%s1644_s5 + $0xa8] sm:$0xff] }
  0x1e   : > { %v1411_v20 = vld [vmem:[%s1644_s5 + $0xd8] sm:$0xff]  ;;  %v1412_v24 = vld [vmem:[%s1644_s5 + $0xe0] sm:$0xff]  ;;  %v1413_v28 = vld [vmem:[%s1644_s5 + $0xe8] sm:$0xff] }
  0x1f   : > { %v1390_v29 = vld [vmem:[%s1644_s5 + $0x30] sm:$0xff]  ;;  %v1391_v33 = vld [vmem:[%s1644_s5 + $0x38] sm:$0xff] }
  0x20   : > { %v1398_v30 = vld [vmem:[%s1644_s5 + $0x70] sm:$0xff]  ;;  %v1399_v34 = vld [vmem:[%s1644_s5 + $0x78] sm:$0xff] }
  0x21   : > { %v1406_v31 = vld [vmem:[%s1644_s5 + $0xb0] sm:$0xff]  ;;  %v1407_v35 = vld [vmem:[%s1644_s5 + $0xb8] sm:$0xff] }
  0x22   : > { %v1414_v32 = vld [vmem:[%s1644_s5 + $0xf0] sm:$0xff]  ;;  %v1415_v36 = vld [vmem:[%s1644_s5 + $0xf8] sm:$0xff] }
  0x2c   : > { %1348 = vmatmul.msk.bf16.gmra.mxu0 %vm574_vm2, %v1385_v9  ;;  %1356 = vmatmul.msk.bf16.gmra.mxu1 %vm574_vm2, %v1393_v10 }
  0x2d   : > { %1364 = vmatmul.msk.bf16.gmra.mxu2 %vm574_vm2, %v1401_v11  ;;  %1372 = vmatmul.msk.bf16.gmra.mxu3 %vm574_vm2, %v1409_v12 }
  0x3c   : > { %1349 = vmatmul.msk.bf16.gmra.mxu0 %vm574_vm2, %v1386_v13  ;;  %1357 = vmatmul.msk.bf16.gmra.mxu1 %vm574_vm2, %v1394_v14 }
  0x3d   : > { %1365 = vmatmul.msk.bf16.gmra.mxu2 %vm574_vm2, %v1402_v15  ;;  %1373 = vmatmul.msk.bf16.gmra.mxu3 %vm574_vm2, %v1410_v16 }
  0x4c   : > { %1350 = vmatmul.msk.bf16.gmra.mxu0 %vm574_vm2, %v1387_v17  ;;  %1358 = vmatmul.msk.bf16.gmra.mxu1 %vm574_vm2, %v1395_v18 }
  0x4d   : > { %1366 = vmatmul.msk.bf16.gmra.mxu2 %vm574_vm2, %v1403_v19  ;;  %1374 = vmatmul.msk.bf16.gmra.mxu3 %vm574_vm2, %v1411_v20 }
  0x5c   : > { %1351 = vmatmul.msk.bf16.gmra.mxu0 %vm574_vm2, %v1388_v21  ;;  %1359 = vmatmul.msk.bf16.gmra.mxu1 %vm574_vm2, %v1396_v22 }
  0x5d   : > { %1367 = vmatmul.msk.bf16.gmra.mxu2 %vm574_vm2, %v1404_v23  ;;  %1375 = vmatmul.msk.bf16.gmra.mxu3 %vm574_vm2, %v1412_v24 }
  0x6c   : > { %1352 = vmatmul.msk.bf16.gmra.mxu0 %vm574_vm2, %v1389_v25  ;;  %1360 = vmatmul.msk.bf16.gmra.mxu1 %vm574_vm2, %v1397_v26 }
  0x6d   : > { %1368 = vmatmul.msk.bf16.gmra.mxu2 %vm574_vm2, %v1405_v27  ;;  %1376 = vmatmul.msk.bf16.gmra.mxu3 %vm574_vm2, %v1413_v28 }
  0x7c   : > { %1353 = vmatmul.msk.bf16.gmra.mxu0 %vm574_vm2, %v1390_v29  ;;  %1361 = vmatmul.msk.bf16.gmra.mxu1 %vm574_vm2, %v1398_v30 }
  0x7d   : > { %1369 = vmatmul.msk.bf16.gmra.mxu2 %vm574_vm2, %v1406_v31  ;;  %1377 = vmatmul.msk.bf16.gmra.mxu3 %vm574_vm2, %v1414_v32 }
  0x8c   : > { %1354 = vmatmul.msk.bf16.gmra.mxu0 %vm574_vm2, %v1391_v33  ;;  %1362 = vmatmul.msk.bf16.gmra.mxu1 %vm574_vm2, %v1399_v34 }
  0x8d   : > { %1370 = vmatmul.msk.bf16.gmra.mxu2 %vm574_vm2, %v1407_v35  ;;  %1378 = vmatmul.msk.bf16.gmra.mxu3 %vm574_vm2, %v1415_v36 }
  0x99   : > { %v687_v38 = vpop.f32.mrf.mxu0  ;;  %v727_v39 = vpop.f32.mrf.mxu1 }
  0x9a   : > { %v847_v40 = vadd.f32 %v1716_v37, %v687_v38  ;;  %v863_v41 = vadd.f32 %v1716_v37, %v727_v39 }
  0x9c   : > { %1042 = vst [vmem:[%s1720_s10] sm:$0xff] %v847_v40 }
  0x9d   : > { %1058 = vst [vmem:[%s1720_s10 + $0x80] sm:$0xff] %v863_v41 }
  0xa0   : > { %v767_v42 = vpop.f32.mrf.mxu2  ;;  %v807_v43 = vpop.f32.mrf.mxu3 }
  0xa1   : > { %v879_v44 = vadd.f32 %v1716_v37, %v767_v42  ;;  %v895_v45 = vadd.f32 %v1716_v37, %v807_v43  ;;  %v689_v46 = vpop.f32.mrf.mxu0  ;;  %v729_v47 = vpop.f32.mrf.mxu1 }
  0xa2   : > { %v848_v48 = vadd.f32 %v1716_v37, %v689_v46  ;;  %v864_v49 = vadd.f32 %v1716_v37, %v729_v47 }
  0xa3   : > { %1074 = vst [vmem:[%s1720_s10 + $0x100] sm:$0xff] %v879_v44 }
  0xa4   : > { %1090 = vst [vmem:[%s1720_s10 + $0x180] sm:$0xff] %v895_v45 }
  0xa5   : > { %1043 = vst [vmem:[%s1720_s10 + $0x8] sm:$0xff] %v848_v48 }
  0xa6   : > { %1059 = vst [vmem:[%s1720_s10 + $0x88] sm:$0xff] %v864_v49 }
  0xa8   : > { %v769_v50 = vpop.f32.mrf.mxu2  ;;  %v809_v51 = vpop.f32.mrf.mxu3 }
  0xa9   : > { %v880_v52 = vadd.f32 %v1716_v37, %v769_v50  ;;  %v896_v53 = vadd.f32 %v1716_v37, %v809_v51  ;;  %v692_v54 = vpop.f32.mrf.mxu0  ;;  %v732_v55 = vpop.f32.mrf.mxu1 }
  0xaa   : > { %v849_v56 = vadd.f32 %v1716_v37, %v692_v54  ;;  %v865_v57 = vadd.f32 %v1716_v37, %v732_v55 }
  0xab   : > { %1075 = vst [vmem:[%s1720_s10 + $0x108] sm:$0xff] %v880_v52 }
  0xac   : > { %1091 = vst [vmem:[%s1720_s10 + $0x188] sm:$0xff] %v896_v53 }
  0xad   : > { %1044 = vst [vmem:[%s1720_s10 + $0x10] sm:$0xff] %v849_v56 }
  0xae   : > { %1060 = vst [vmem:[%s1720_s10 + $0x90] sm:$0xff] %v865_v57 }
  0xb0   : > { %v772_v58 = vpop.f32.mrf.mxu2  ;;  %v812_v59 = vpop.f32.mrf.mxu3 }
  0xb1   : > { %v881_v60 = vadd.f32 %v1716_v37, %v772_v58  ;;  %v897_v61 = vadd.f32 %v1716_v37, %v812_v59  ;;  %v694_v62 = vpop.f32.mrf.mxu0  ;;  %v734_v63 = vpop.f32.mrf.mxu1 }
  0xb2   : > { %v850_v0 = vadd.f32 %v1716_v37, %v694_v62  ;;  %v866_v1 = vadd.f32 %v1716_v37, %v734_v63 }
  0xb3   : > { %1076 = vst [vmem:[%s1720_s10 + $0x110] sm:$0xff] %v881_v60 }
  0xb4   : > { %1092 = vst [vmem:[%s1720_s10 + $0x190] sm:$0xff] %v897_v61 }
  0xb5   : > { %1045 = vst [vmem:[%s1720_s10 + $0x18] sm:$0xff] %v850_v0 }
  0xb6   : > { %1061 = vst [vmem:[%s1720_s10 + $0x98] sm:$0xff] %v866_v1 }
  0xb8   : > { %v774_v2 = vpop.f32.mrf.mxu2  ;;  %v814_v3 = vpop.f32.mrf.mxu3 }
  0xb9   : > { %v882_v4 = vadd.f32 %v1716_v37, %v774_v2  ;;  %v898_v5 = vadd.f32 %v1716_v37, %v814_v3  ;;  %v697_v6 = vpop.f32.mrf.mxu0  ;;  %v737_v7 = vpop.f32.mrf.mxu1 }
  0xba   : > { %v851_v8 = vadd.f32 %v1716_v37, %v697_v6  ;;  %v867_v9 = vadd.f32 %v1716_v37, %v737_v7 }
  0xbb   : > { %1077 = vst [vmem:[%s1720_s10 + $0x118] sm:$0xff] %v882_v4 }
  0xbc   : > { %1093 = vst [vmem:[%s1720_s10 + $0x198] sm:$0xff] %v898_v5 }
  0xbd   : > { %1046 = vst [vmem:[%s1720_s10 + $0x20] sm:$0xff] %v851_v8 }
  0xbe   : > { %1062 = vst [vmem:[%s1720_s10 + $0xa0] sm:$0xff] %v867_v9 }
  0xc0   : > { %v777_v10 = vpop.f32.mrf.mxu2  ;;  %v817_v11 = vpop.f32.mrf.mxu3 }
  0xc1   : > { %v883_v12 = vadd.f32 %v1716_v37, %v777_v10  ;;  %v899_v13 = vadd.f32 %v1716_v37, %v817_v11  ;;  %v699_v14 = vpop.f32.mrf.mxu0  ;;  %v739_v15 = vpop.f32.mrf.mxu1 }
  0xc2   : > { %v852_v16 = vadd.f32 %v1716_v37, %v699_v14  ;;  %v868_v17 = vadd.f32 %v1716_v37, %v739_v15 }
  0xc3   : > { %1078 = vst [vmem:[%s1720_s10 + $0x120] sm:$0xff] %v883_v12 }
  0xc4   : > { %1094 = vst [vmem:[%s1720_s10 + $0x1a0] sm:$0xff] %v899_v13 }
  0xc5   : > { %1047 = vst [vmem:[%s1720_s10 + $0x28] sm:$0xff] %v852_v16 }
  0xc6   : > { %1063 = vst [vmem:[%s1720_s10 + $0xa8] sm:$0xff] %v868_v17 }
  0xc8   : > { %v779_v18 = vpop.f32.mrf.mxu2  ;;  %v819_v19 = vpop.f32.mrf.mxu3 }
  0xc9   : > { %v884_v20 = vadd.f32 %v1716_v37, %v779_v18  ;;  %v900_v21 = vadd.f32 %v1716_v37, %v819_v19  ;;  %v702_v22 = vpop.f32.mrf.mxu0  ;;  %v742_v23 = vpop.f32.mrf.mxu1 }
  0xca   : > { %v853_v24 = vadd.f32 %v1716_v37, %v702_v22  ;;  %v869_v25 = vadd.f32 %v1716_v37, %v742_v23 }
  0xcb   : > { %1079 = vst [vmem:[%s1720_s10 + $0x128] sm:$0xff] %v884_v20 }
  0xcc   : > { %1095 = vst [vmem:[%s1720_s10 + $0x1a8] sm:$0xff] %v900_v21 }
  0xcd   : > { %1048 = vst [vmem:[%s1720_s10 + $0x30] sm:$0xff] %v853_v24 }
  0xce   : > { %1064 = vst [vmem:[%s1720_s10 + $0xb0] sm:$0xff] %v869_v25 }
  0xd0   : > { %v782_v26 = vpop.f32.mrf.mxu2  ;;  %v822_v27 = vpop.f32.mrf.mxu3 }
  0xd1   : > { %v885_v28 = vadd.f32 %v1716_v37, %v782_v26  ;;  %v901_v29 = vadd.f32 %v1716_v37, %v822_v27  ;;  %v704_v30 = vpop.f32.mrf.mxu0  ;;  %v744_v31 = vpop.f32.mrf.mxu1 }
  0xd2   : > { %v854_v32 = vadd.f32 %v1716_v37, %v704_v30  ;;  %v870_v33 = vadd.f32 %v1716_v37, %v744_v31 }
  0xd3   : > { %1080 = vst [vmem:[%s1720_s10 + $0x130] sm:$0xff] %v885_v28 }
  0xd4   : > { %1096 = vst [vmem:[%s1720_s10 + $0x1b0] sm:$0xff] %v901_v29 }
  0xd5   : > { %1049 = vst [vmem:[%s1720_s10 + $0x38] sm:$0xff] %v854_v32 }
  0xd6   : > { %1065 = vst [vmem:[%s1720_s10 + $0xb8] sm:$0xff] %v870_v33 }
  0xd8   : > { %v784_v34 = vpop.f32.mrf.mxu2  ;;  %v824_v35 = vpop.f32.mrf.mxu3 }
  0xd9   : > { %v886_v36 = vadd.f32 %v1716_v37, %v784_v34  ;;  %v902_v38 = vadd.f32 %v1716_v37, %v824_v35  ;;  %v707_v39 = vpop.f32.mrf.mxu0  ;;  %v747_v40 = vpop.f32.mrf.mxu1 }
  0xda   : > { %v855_v41 = vadd.f32 %v1716_v37, %v707_v39  ;;  %v871_v42 = vadd.f32 %v1716_v37, %v747_v40 }
  0xdb   : > { %1081 = vst [vmem:[%s1720_s10 + $0x138] sm:$0xff] %v886_v36 }
  0xdc   : > { %1097 = vst [vmem:[%s1720_s10 + $0x1b8] sm:$0xff] %v902_v38 }
  0xdd   : > { %1050 = vst [vmem:[%s1720_s10 + $0x40] sm:$0xff] %v855_v41 }
  0xde   : > { %1066 = vst [vmem:[%s1720_s10 + $0xc0] sm:$0xff] %v871_v42 }
  0xe0   : > { %v787_v43 = vpop.f32.mrf.mxu2  ;;  %v827_v44 = vpop.f32.mrf.mxu3 }
  0xe1   : > { %v887_v45 = vadd.f32 %v1716_v37, %v787_v43  ;;  %v903_v46 = vadd.f32 %v1716_v37, %v827_v44  ;;  %v709_v47 = vpop.f32.mrf.mxu0  ;;  %v749_v48 = vpop.f32.mrf.mxu1 }
  0xe2   : > { %v856_v49 = vadd.f32 %v1716_v37, %v709_v47  ;;  %v872_v50 = vadd.f32 %v1716_v37, %v749_v48 }
  0xe3   : > { %1082 = vst [vmem:[%s1720_s10 + $0x140] sm:$0xff] %v887_v45 }
  0xe4   : > { %1098 = vst [vmem:[%s1720_s10 + $0x1c0] sm:$0xff] %v903_v46 }
  0xe5   : > { %1051 = vst [vmem:[%s1720_s10 + $0x48] sm:$0xff] %v856_v49 }
  0xe6   : > { %1067 = vst [vmem:[%s1720_s10 + $0xc8] sm:$0xff] %v872_v50 }
  0xe8   : > { %v789_v51 = vpop.f32.mrf.mxu2  ;;  %v829_v52 = vpop.f32.mrf.mxu3 }
  0xe9   : > { %v888_v53 = vadd.f32 %v1716_v37, %v789_v51  ;;  %v904_v54 = vadd.f32 %v1716_v37, %v829_v52  ;;  %v712_v55 = vpop.f32.mrf.mxu0  ;;  %v752_v56 = vpop.f32.mrf.mxu1 }
  0xea   : > { %v857_v57 = vadd.f32 %v1716_v37, %v712_v55  ;;  %v873_v58 = vadd.f32 %v1716_v37, %v752_v56 }
  0xeb   : > { %1083 = vst [vmem:[%s1720_s10 + $0x148] sm:$0xff] %v888_v53 }
  0xec   : > { %1099 = vst [vmem:[%s1720_s10 + $0x1c8] sm:$0xff] %v904_v54 }
  0xed   : > { %1052 = vst [vmem:[%s1720_s10 + $0x50] sm:$0xff] %v857_v57 }
  0xee   : > { %1068 = vst [vmem:[%s1720_s10 + $0xd0] sm:$0xff] %v873_v58 }
  0xf0   : > { %v792_v59 = vpop.f32.mrf.mxu2  ;;  %v832_v60 = vpop.f32.mrf.mxu3 }
  0xf1   : > { %v889_v61 = vadd.f32 %v1716_v37, %v792_v59  ;;  %v905_v62 = vadd.f32 %v1716_v37, %v832_v60  ;;  %v714_v63 = vpop.f32.mrf.mxu0  ;;  %v754_v0 = vpop.f32.mrf.mxu1 }
  0xf2   : > { %v858_v1 = vadd.f32 %v1716_v37, %v714_v63  ;;  %v874_v2 = vadd.f32 %v1716_v37, %v754_v0 }
  0xf3   : > { %1084 = vst [vmem:[%s1720_s10 + $0x150] sm:$0xff] %v889_v61 }
  0xf4   : > { %1100 = vst [vmem:[%s1720_s10 + $0x1d0] sm:$0xff] %v905_v62 }
  0xf5   : > { %1053 = vst [vmem:[%s1720_s10 + $0x58] sm:$0xff] %v858_v1 }
  0xf6   : > { %1069 = vst [vmem:[%s1720_s10 + $0xd8] sm:$0xff] %v874_v2 }
  0xf8   : > { %v794_v3 = vpop.f32.mrf.mxu2  ;;  %v834_v4 = vpop.f32.mrf.mxu3 }
  0xf9   : > { %v890_v5 = vadd.f32 %v1716_v37, %v794_v3  ;;  %v906_v6 = vadd.f32 %v1716_v37, %v834_v4  ;;  %v717_v7 = vpop.f32.mrf.mxu0  ;;  %v757_v8 = vpop.f32.mrf.mxu1 }
  0xfa   : > { %v859_v9 = vadd.f32 %v1716_v37, %v717_v7  ;;  %v875_v10 = vadd.f32 %v1716_v37, %v757_v8 }
  0xfb   : > { %1085 = vst [vmem:[%s1720_s10 + $0x158] sm:$0xff] %v890_v5 }
  0xfc   : > { %1101 = vst [vmem:[%s1720_s10 + $0x1d8] sm:$0xff] %v906_v6 }
  0xfd   : > { %1054 = vst [vmem:[%s1720_s10 + $0x60] sm:$0xff] %v859_v9 }
  0xfe   : > { %1070 = vst [vmem:[%s1720_s10 + $0xe0] sm:$0xff] %v875_v10 }
 0x100   : > { %v797_v11 = vpop.f32.mrf.mxu2  ;;  %v837_v12 = vpop.f32.mrf.mxu3 }
 0x101   : > { %v891_v13 = vadd.f32 %v1716_v37, %v797_v11  ;;  %v907_v14 = vadd.f32 %v1716_v37, %v837_v12  ;;  %v719_v15 = vpop.f32.mrf.mxu0  ;;  %v759_v16 = vpop.f32.mrf.mxu1 }
 0x102   : > { %v860_v17 = vadd.f32 %v1716_v37, %v719_v15  ;;  %v876_v18 = vadd.f32 %v1716_v37, %v759_v16 }
 0x103   : > { %1086 = vst [vmem:[%s1720_s10 + $0x160] sm:$0xff] %v891_v13 }
 0x104   : > { %1102 = vst [vmem:[%s1720_s10 + $0x1e0] sm:$0xff] %v907_v14 }
 0x105   : > { %1055 = vst [vmem:[%s1720_s10 + $0x68] sm:$0xff] %v860_v17 }
 0x106   : > { %1071 = vst [vmem:[%s1720_s10 + $0xe8] sm:$0xff] %v876_v18 }
 0x108   : > { %v799_v19 = vpop.f32.mrf.mxu2  ;;  %v839_v20 = vpop.f32.mrf.mxu3 }
 0x109   : > { %v892_v21 = vadd.f32 %v1716_v37, %v799_v19  ;;  %v908_v22 = vadd.f32 %v1716_v37, %v839_v20  ;;  %v722_v23 = vpop.f32.mrf.mxu0  ;;  %v762_v24 = vpop.f32.mrf.mxu1 }
 0x10a   : > { %v861_v25 = vadd.f32 %v1716_v37, %v722_v23  ;;  %v877_v26 = vadd.f32 %v1716_v37, %v762_v24 }
 0x10b   : > { %1087 = vst [vmem:[%s1720_s10 + $0x168] sm:$0xff] %v892_v21 }
 0x10c   : > { %1103 = vst [vmem:[%s1720_s10 + $0x1e8] sm:$0xff] %v908_v22 }
 0x10d   : > { %1056 = vst [vmem:[%s1720_s10 + $0x70] sm:$0xff] %v861_v25 }
 0x10e   : > { %1072 = vst [vmem:[%s1720_s10 + $0xf0] sm:$0xff] %v877_v26 }
 0x110   : > { %v802_v27 = vpop.f32.mrf.mxu2  ;;  %v842_v28 = vpop.f32.mrf.mxu3 }
 0x111   : > { %v893_v29 = vadd.f32 %v1716_v37, %v802_v27  ;;  %v909_v30 = vadd.f32 %v1716_v37, %v842_v28  ;;  %v724_v31 = vpop.f32.mrf.mxu0  ;;  %v764_v32 = vpop.f32.mrf.mxu1 }
 0x112   : > { %v862_v33 = vadd.f32 %v1716_v37, %v724_v31  ;;  %v878_v34 = vadd.f32 %v1716_v37, %v764_v32 }
 0x113   : > { %1088 = vst [vmem:[%s1720_s10 + $0x170] sm:$0xff] %v893_v29 }
 0x114   : > { %1104 = vst [vmem:[%s1720_s10 + $0x1f0] sm:$0xff] %v909_v30 }
 0x115   : > { %1057 = vst [vmem:[%s1720_s10 + $0x78] sm:$0xff] %v862_v33 }
 0x116   : > { %1073 = vst [vmem:[%s1720_s10 + $0xf8] sm:$0xff] %v878_v34 }
 0x118   : > { %v804_v35 = vpop.f32.mrf.mxu2  ;;  %v844_v36 = vpop.f32.mrf.mxu3 }
 0x119   : > { %v894_v38 = vadd.f32 %v1716_v37, %v804_v35  ;;  %v910_v39 = vadd.f32 %v1716_v37, %v844_v36 }
 0x11b   : > { %1089 = vst [vmem:[%s1720_s10 + $0x178] sm:$0xff] %v894_v38 }
 0x11c   : > { %1105 = vst [vmem:[%s1720_s10 + $0x1f8] sm:$0xff] %v910_v39 }
 0x11d   : > { %1506 = shalt.err (!%p1503_p5)
}
 0x11e   : > { %s1560_s6 = smov 128   ;;  %s1561_s8 = smov 8  }
 0x11f   : > { %1420 = dma.vmem_to_hbm [thread:$0]  (%p1622_p4), %s1120_s15, 8192, %s1122_s23, %s1107_s26, %s1560_s6, %s1560_s6, %s1561_s8  }
 0x120 PF: > { %p1426_p6 = scmp.ge.s32.totalorder %s1557_s17, 2  ;;  %s1136_s9 = sand.u32 1, %s1537_s12  }
 0x121   : > { %s1137_s10 = scalar_lea.sflag [#allocation4], %s1136_s9 }
 0x122   : > { %p1423_p7 = pnand %p1426_p6, %p1629_p8 }
 0x124   : > { %p1424_p9 = pneg %p1423_p7 }
 0x126   : > { %1532 = dma.done.wait (%p1424_p9), %s1137_s10, 8192  }
 0x127   : > { %1534 = vsyncadd (%p1424_p9), %s1137_s10, 4294959104  ;;  %s16_s17 = sadd.s32 1, %s1557_s17   ;;  %s1893_s12 = smov %s1541_s13 }
 0x128   : > { %p13_p10 = scmp.ge.s32.totalorder %s16_s17, 4   ;;  %s1894_s13 = smov %s1545_s14 }
 0x129   : > { %s1895_s14 = smov %s1635_s25  ;;  %s1896_s15 = smov %s1553_s16 }
 0x12a   : > { %s1897_s16 = smov %s1899_s20  ;;  %15 = sbr.rel (!%p13_p10) target bundleno = 4 (0x4), region = 78 }
 0x12f   :  { %1143 = vsyncpa [#allocation4], 1 }
 0x130   :  { %1145 = vsyncpa [#allocation4 + $0x1], 1 }

</bundles_post_ra>
